<compile_context>
chip_gen: v5e
topology: v5e:2x2
jax: 0.10.0
libtpu: 0.0.40
codegen_flags: <defaults>
</compile_context>

<pallas_src>
from functools import partial

import jax
import jax.numpy as jnp
from jax import lax
from jax.experimental import pallas as pl
from jax.experimental.pallas import tpu as pltpu  # noqa: F401  (TPU backend)

K = 3          # conv kernel size
KK_PAD = 32    # contraction dim K*K*Cin = 27, zero-padded to 32
NOUT_PAD = 128  # lane-dense output width (true Nout = 11 sliced in wrapper)


def prepare_params(conv_w, fc_w):
    """One-time weight preprocessing (hoisted out of the per-call path).

    conv_w: (Cout, Cin, 3, 3) f32   ->  (KK_PAD, Cout) bf16
    fc_w:   (Nout, Cout)      f32   ->  (Cout, NOUT_PAD) f32 (zero lane padding)
    """
    Cout, Cin, _, _ = conv_w.shape
    Nout = fc_w.shape[0]
    # (Cout, Cin, kh, kw) -> (kh, kw, Cin, Cout) -> (27, Cout); row index is
    # (dy*K + dx)*Cin + c, matching the tap concat order in fused_forward.
    w = jnp.transpose(conv_w, (2, 3, 1, 0)).reshape(K * K * Cin, Cout)
    wconv_mat = (jnp.zeros((KK_PAD, Cout), jnp.bfloat16)
                 .at[:K * K * Cin, :].set(w.astype(jnp.bfloat16)))
    # (Nout, Cout) -> (Cout, NOUT_PAD), zero columns 11..127 (sliced off later).
    wfc_mat = (jnp.zeros((Cout, NOUT_PAD), jnp.float32)
               .at[:, :Nout].set(jnp.transpose(fc_w, (1, 0)).astype(jnp.float32)))
    return wconv_mat, wfc_mat


@partial(jax.jit, static_argnames=("nout",))
def fused_forward(x_nchw, wconv_mat, wfc_mat, *, nout):
    """x_nchw: (N, Cin, H, W); returns (N, nout)."""
    N, Cin, H, W = x_nchw.shape
    Cout = wconv_mat.shape[1]
    HW = H * W
    inv_hw = 1.0 / float(HW)

    # --- layout glue (fused by jit into the same executable) -----------------
    # NCHW -> NHWC, zero-pad spatially, im2col 3x3 patches -> (N*HW, 27) -> pad
    # the contraction dim to 32 aligned bf16 lanes.
    x_nhwc = jnp.transpose(x_nchw, (0, 2, 3, 1))
    x_pad = jnp.pad(x_nhwc, ((0, 0), (1, 1), (1, 1), (0, 0)))
    taps = [x_pad[:, dy:dy + H, dx:dx + W, :] for dy in range(K) for dx in range(K)]
    patches = jnp.concatenate(taps, axis=-1).reshape(N * HW, K * K * Cin)
    patches = jnp.pad(patches, ((0, 0), (0, KK_PAD - K * K * Cin))).astype(jnp.bfloat16)

    # --- fused kernel: conv-matmul -> tanh -> avg-pool -> FC ------------------
    def kernel(p_ref, wc_ref, wf_ref, o_ref):
        # conv as one tall MXU matmul, M = N*HW, K = 32 (bf16 in, f32 accumulate)
        conv = jnp.dot(p_ref[...], wc_ref[...],
                       preferred_element_type=jnp.float32)        # (N*HW, Cout)
        act = jnp.tanh(conv)                                       # EUP, f32
        # Adaptive avg-pool (1,1): per-sample sublane-sum over HW, then scale.
        pooled = jnp.sum(act.reshape(N, HW, Cout), axis=1) * inv_hw  # (N, Cout)
        # Tiny FC at M=N against the lane-padded (Cout, 128) weight.
        o_ref[...] = jnp.dot(pooled, wf_ref[...],
                             preferred_element_type=jnp.float32)   # (N, 128)

    out_padded = pl.pallas_call(
        kernel,
        out_shape=jax.ShapeDtypeStruct((N, NOUT_PAD), jnp.float32),
        grid=(1,),  # whole (tiny) problem in one grid step; for large N*HW,
                    # split the row axis into a leading "parallel" grid dim.
        in_specs=[
            pl.BlockSpec((N * HW, KK_PAD), lambda i: (0, 0)),
            pl.BlockSpec((KK_PAD, Cout), lambda i: (0, 0)),
            pl.BlockSpec((Cout, NOUT_PAD), lambda i: (0, 0)),
        ],
        out_specs=pl.BlockSpec((N, NOUT_PAD), lambda i: (0, 0)),
    )(patches, wconv_mat, wfc_mat)

    # strip the lane padding back to the true 11 outputs
    return out_padded[:, :nout].astype(x_nchw.dtype)


def reference_forward(x, conv_w, fc_w):
    """Pure-JAX reference of the PyTorch module (f32)."""
    conv = lax.conv_general_dilated(
        x, conv_w, window_strides=(1, 1), padding="SAME",
        dimension_numbers=("NCHW", "OIHW", "NCHW"))
    act = jnp.tanh(conv)
    pooled = jnp.mean(act, axis=(2, 3))            # (N, Cout)
    return pooled @ fc_w.T                          # (N, Nout)


def init_params(key):
    k1, k2 = jax.random.split(key)
    conv_w = jax.random.uniform(k1, (32, 3, 3, 3), jnp.float32,
                                minval=-1.0, maxval=1.0) * (1.0 / (3 * 3 * 3) ** 0.5)
    fc_w = jax.random.uniform(k2, (11, 32), jnp.float32,
                              minval=-1.0, maxval=1.0) * (1.0 / 32 ** 0.5)
    return conv_w, fc_w


if __name__ == "__main__":
    key = jax.random.PRNGKey(0)
    kx, kp = jax.random.split(key)
    # Small NCHW input consistent with the module: (N=2, C=3, H=16, W=16)
    x = jax.random.normal(kx, (2, 3, 16, 16), jnp.float32)
    conv_w, fc_w = init_params(kp)

    # one-time weight prep, then the jitted fused forward
    wconv_mat, wfc_mat = prepare_params(conv_w, fc_w)
    y = fused_forward(x, wconv_mat, wfc_mat, nout=fc_w.shape[0])
    jax.block_until_ready(y)

    assert y.shape == (2, 11), y.shape
    y_ref = reference_forward(x, conv_w, fc_w)
    max_err = float(jnp.max(jnp.abs(y - y_ref)))
    assert max_err < 1e-1, f"max abs err {max_err}"  # generous: bf16 conv inputs
    print("KERNEL_OK")
</pallas_src>

<mosaic_0001>
module attributes {stable_mosaic.version = 11 : i64} {
  func.func @kernel(%arg0: i32, %arg1: memref<512x32xbf16, #tpu.memory_space<vmem>>, %arg2: memref<32x32xbf16, #tpu.memory_space<vmem>>, %arg3: memref<32x128xf32, #tpu.memory_space<vmem>>, %arg4: memref<2x128xf32, #tpu.memory_space<vmem>>) attributes {dimension_semantics = [#tpu.dimension_semantics<arbitrary>], iteration_bounds = array<i64: 1>, scalar_prefetch = 0 : i64, scratch_operands = 0 : i64, tpu.core_type = #tpu.core_type<tc>, window_params = [{pipeline_mode = #tpu.pipeline_mode<synchronous>, transform_indices = @transform_0, window_bounds = array<i64: 512, 32>}, {pipeline_mode = #tpu.pipeline_mode<synchronous>, transform_indices = @transform_1, window_bounds = array<i64: 32, 32>}, {pipeline_mode = #tpu.pipeline_mode<synchronous>, transform_indices = @transform_2, window_bounds = array<i64: 32, 128>}, {pipeline_mode = #tpu.pipeline_mode<synchronous>, transform_indices = @transform_3, window_bounds = array<i64: 2, 128>}]} {
    %c0 = arith.constant 0 : index
    %c0_0 = arith.constant 0 : index
    %0 = vector.load %arg1[%c0, %c0_0] : memref<512x32xbf16, #tpu.memory_space<vmem>>, vector<512x32xbf16>
    %c0_1 = arith.constant 0 : index
    %c0_2 = arith.constant 0 : index
    %1 = vector.load %arg2[%c0_1, %c0_2] : memref<32x32xbf16, #tpu.memory_space<vmem>>, vector<32x32xbf16>
    %cst = arith.constant dense<0.000000e+00> : vector<512x32xf32>
    %2 = tpu.matmul %0, %1, %cst {dimension_numbers = #tpu.dot_dimension_numbers<[1], [0], [0], [1], [0, 0, 1, 1], [], []>} : vector<512x32xbf16>, vector<32x32xbf16>, vector<512x32xf32> -> vector<512x32xf32>
    %3 = math.tanh %2 : vector<512x32xf32>
    %4 = vector.shape_cast %3 : vector<512x32xf32> to vector<2x256x32xf32>
    %cst_3 = arith.constant dense<0.000000e+00> : vector<2x32xf32>
    %5 = vector.multi_reduction <add>, %4, %cst_3 [1] : vector<2x256x32xf32> to vector<2x32xf32>
    %cst_4 = arith.constant 3.906250e-03 : f32
    %6 = vector.broadcast %cst_4 : f32 to vector<2x32xf32>
    %7 = arith.mulf %5, %6 : vector<2x32xf32>
    %c0_5 = arith.constant 0 : index
    %c0_6 = arith.constant 0 : index
    %8 = vector.load %arg3[%c0_5, %c0_6] : memref<32x128xf32, #tpu.memory_space<vmem>>, vector<32x128xf32>
    %cst_7 = arith.constant dense<0.000000e+00> : vector<2x128xf32>
    %9 = tpu.matmul %7, %8, %cst_7 {dimension_numbers = #tpu.dot_dimension_numbers<[1], [0], [0], [1], [0, 0, 1, 1], [], []>} : vector<2x32xf32>, vector<32x128xf32>, vector<2x128xf32> -> vector<2x128xf32>
    %c0_8 = arith.constant 0 : index
    %c0_9 = arith.constant 0 : index
    %10 = vector.load %arg4[%c0_8, %c0_9] : memref<2x128xf32, #tpu.memory_space<vmem>>, vector<2x128xf32>
    tpu.vector_store %arg4[%c0_8, %c0_9], %9 {strides = array<i32>} : memref<2x128xf32, #tpu.memory_space<vmem>>, vector<2x128xf32>,
    return
  }
  func.func @transform_0(%arg0: i32) -> (i32, i32) {
    %c0_i32 = arith.constant 0 : i32
    %c0_i32_0 = arith.constant 0 : i32
    %c0_i32_1 = arith.constant 0 : i32
    return %c0_i32, %c0_i32_0 : i32, i32
  }
  func.func @transform_1(%arg0: i32) -> (i32, i32) {
    %c0_i32 = arith.constant 0 : i32
    %c0_i32_0 = arith.constant 0 : i32
    %c0_i32_1 = arith.constant 0 : i32
    return %c0_i32, %c0_i32_0 : i32, i32
  }
  func.func @transform_2(%arg0: i32) -> (i32, i32) {
    %c0_i32 = arith.constant 0 : i32
    %c0_i32_0 = arith.constant 0 : i32
    %c0_i32_1 = arith.constant 0 : i32
    return %c0_i32, %c0_i32_0 : i32, i32
  }
  func.func @transform_3(%arg0: i32) -> (i32, i32) {
    %c0_i32 = arith.constant 0 : i32
    %c0_i32_0 = arith.constant 0 : i32
    %c0_i32_1 = arith.constant 0 : i32
    return %c0_i32, %c0_i32_0 : i32, i32
  }
}

</mosaic_0001>

<bundles_post_ra>
// kernel: fused_forward.1
= control target key start
LH: loop header
LB: loop body
LE: loop exit
PB: predicated region body
PF: predicated region fallthrough
CT: control target
= control target key end

     0   :  { %s1480_s0 = inlined_call_operand.vmem [shape: bf16[512,32], index: 0, kind: input, shape index: {}]   ;;  %s1481_s1 = inlined_call_operand.vmem [shape: bf16[32,32], index: 1, kind: input, shape index: {}]   ;;  %s1482_s2 = inlined_call_operand.vmem [shape: f32[32,128], index: 2, kind: input, shape index: {}]   ;;  %s1483_s3 = inlined_call_operand.hbm [shape: f32[2,128], index: 3, kind: output, shape index: {}]  }
   0x1   :  { %v975_v0 = vld [vmem:[%s1481_s1 + $0x8] sm:$0xff]  ;;  %v974_v1 = vld [vmem:[%s1481_s1] sm:$0xff] }
   0x2   :  { %359 = vmatpush.bf16.msra.mxu0 %v975_v0  ;;  %977 = vmatpush.bf16.msra.mxu2 %v975_v0 }
   0x3   :  { %8 = vsyncpa [#allocation3], 0  ;;  %978 = vmatpush.bf16.msra.mxu3 %v975_v0  ;;  %976 = vmatpush.bf16.msra.mxu1 %v975_v0  ;;  %v942_v2 = vld [vmem:[%s1480_s0] sm:$0xff]  ;;  %v956_v3 = vld [vmem:[%s1480_s0 + $0x70] sm:$0xff]  ;;  %vm256_vm0 = vcmask 261120   ;;  %vm732_vm1 = vcmask 1041409  }
   0x4   :  { %v965_v4 = vld [vmem:[%s1480_s0 + $0xb8] sm:$0xff]  ;;  %v943_v5 = vld [vmem:[%s1480_s0 + $0x8] sm:$0xff]  ;;  %v966_v7 = vld [vmem:[%s1480_s0 + $0xc0] sm:$0xff]  ;;  %s764_s6 = sshll.u32 %s1483_s3, 4  ;;  %s765_s6 = int_to_ptr.hbm [resolvable:$true] %s764_s6 }
   0x5   :  { %v957_v6 = vld [vmem:[%s1480_s0 + $0x78] sm:$0xff]  ;;  %v950_v8 = vld [vmem:[%s1480_s0 + $0x40] sm:$0xff]  ;;  %v944_v9 = vld [vmem:[%s1480_s0 + $0x10] sm:$0xff] }
   0x6   :  { %360 = vmatpush.bf16.msra.mxu0 %v974_v1  ;;  %980 = vmatpush.bf16.msra.mxu2 %v974_v1  ;;  %v958_v10 = vld [vmem:[%s1480_s0 + $0x80] sm:$0xff]  ;;  %v967_v11 = vld [vmem:[%s1480_s0 + $0xc8] sm:$0xff]  ;;  %v945_v13 = vld [vmem:[%s1480_s0 + $0x18] sm:$0xff] }
   0x7   :  { %981 = vmatpush.bf16.msra.mxu3 %v974_v1  ;;  %979 = vmatpush.bf16.msra.mxu1 %v974_v1  ;;  %v951_v12 = vld [vmem:[%s1480_s0 + $0x48] sm:$0xff]  ;;  %v968_v15 = vld [vmem:[%s1480_s0 + $0xd0] sm:$0xff]  ;;  %v946_v17 = vld [vmem:[%s1480_s0 + $0x20] sm:$0xff] }
   0x8   :  { %v959_v14 = vld [vmem:[%s1480_s0 + $0x88] sm:$0xff]  ;;  %v952_v16 = vld [vmem:[%s1480_s0 + $0x50] sm:$0xff]  ;;  %v969_v19 = vld [vmem:[%s1480_s0 + $0xd8] sm:$0xff] }
   0x9   :  { %909 = vmatmul.msk.bf16.vlgmr.msra.gmra.mxu0 %vm256_vm0, %v942_v2  ;;  %923 = vmatmul.msk.bf16.vlgmr.msra.gmra.mxu2 %vm256_vm0, %v956_v3  ;;  %v960_v18 = vld [vmem:[%s1480_s0 + $0x90] sm:$0xff]  ;;  %v953_v20 = vld [vmem:[%s1480_s0 + $0x58] sm:$0xff]  ;;  %v947_v21 = vld [vmem:[%s1480_s0 + $0x28] sm:$0xff] }
   0xa   :  { %932 = vmatmul.msk.bf16.vlgmr.msra.gmra.mxu3 %vm256_vm0, %v965_v4  ;;  %917 = vmatmul.msk.bf16.vlgmr.msra.gmra.mxu1 %vm256_vm0, %v950_v8  ;;  %v961_v22 = vld [vmem:[%s1480_s0 + $0x98] sm:$0xff]  ;;  %v970_v23 = vld [vmem:[%s1480_s0 + $0xe0] sm:$0xff]  ;;  %v948_v25 = vld [vmem:[%s1480_s0 + $0x30] sm:$0xff] }
   0xb   :  { %v954_v24 = vld [vmem:[%s1480_s0 + $0x60] sm:$0xff]  ;;  %v971_v27 = vld [vmem:[%s1480_s0 + $0xe8] sm:$0xff]  ;;  %v949_v29 = vld [vmem:[%s1480_s0 + $0x38] sm:$0xff] }
   0xc   :  { %v962_v26 = vld [vmem:[%s1480_s0 + $0xa0] sm:$0xff]  ;;  %v955_v28 = vld [vmem:[%s1480_s0 + $0x68] sm:$0xff]  ;;  %v972_v31 = vld [vmem:[%s1480_s0 + $0xf0] sm:$0xff] }
   0xd   :  { %v963_v30 = vld [vmem:[%s1480_s0 + $0xa8] sm:$0xff]  ;;  %v964_v32 = vld [vmem:[%s1480_s0 + $0xb0] sm:$0xff]  ;;  %v973_v34 = vld [vmem:[%s1480_s0 + $0xf8] sm:$0xff] }
  0x19   :  { %910 = vmatmul.msk.bf16.gmra.mxu0 %vm256_vm0, %v943_v5  ;;  %924 = vmatmul.msk.bf16.gmra.mxu2 %vm256_vm0, %v957_v6 }
  0x1a   :  { %933 = vmatmul.msk.bf16.gmra.mxu3 %vm256_vm0, %v966_v7  ;;  %918 = vmatmul.msk.bf16.gmra.mxu1 %vm256_vm0, %v951_v12 }
  0x29   :  { %911 = vmatmul.msk.bf16.gmra.mxu0 %vm256_vm0, %v944_v9  ;;  %925 = vmatmul.msk.bf16.gmra.mxu2 %vm256_vm0, %v958_v10 }
  0x2a   :  { %934 = vmatmul.msk.bf16.gmra.mxu3 %vm256_vm0, %v967_v11  ;;  %919 = vmatmul.msk.bf16.gmra.mxu1 %vm256_vm0, %v952_v16 }
  0x39   :  { %912 = vmatmul.msk.bf16.gmra.mxu0 %vm256_vm0, %v945_v13  ;;  %926 = vmatmul.msk.bf16.gmra.mxu2 %vm256_vm0, %v959_v14 }
  0x3a   :  { %935 = vmatmul.msk.bf16.gmra.mxu3 %vm256_vm0, %v968_v15  ;;  %920 = vmatmul.msk.bf16.gmra.mxu1 %vm256_vm0, %v953_v20 }
  0x49   :  { %913 = vmatmul.msk.bf16.gmra.mxu0 %vm256_vm0, %v946_v17  ;;  %927 = vmatmul.msk.bf16.gmra.mxu2 %vm256_vm0, %v960_v18 }
  0x4a   :  { %936 = vmatmul.msk.bf16.gmra.mxu3 %vm256_vm0, %v969_v19  ;;  %921 = vmatmul.msk.bf16.gmra.mxu1 %vm256_vm0, %v954_v24 }
  0x59   :  { %914 = vmatmul.msk.bf16.gmra.mxu0 %vm256_vm0, %v947_v21  ;;  %928 = vmatmul.msk.bf16.gmra.mxu2 %vm256_vm0, %v961_v22 }
  0x5a   :  { %937 = vmatmul.msk.bf16.gmra.mxu3 %vm256_vm0, %v970_v23  ;;  %922 = vmatmul.msk.bf16.gmra.mxu1 %vm256_vm0, %v955_v28 }
  0x69   :  { %915 = vmatmul.msk.bf16.gmra.mxu0 %vm256_vm0, %v948_v25  ;;  %929 = vmatmul.msk.bf16.gmra.mxu2 %vm256_vm0, %v962_v26 }
  0x6a   :  { %938 = vmatmul.msk.bf16.gmra.mxu3 %vm256_vm0, %v971_v27  ;;  %v729_v27 = vld [vmem:[%s1482_s2 + $0x18] sm:$0xff] }
  0x6b   :  { %748 = vmatpush.msrb.mxu1 %v729_v27 }
  0x79   :  { %916 = vmatmul.msk.bf16.gmra.mxu0 %vm256_vm0, %v949_v29  ;;  %930 = vmatmul.msk.bf16.gmra.mxu2 %vm256_vm0, %v963_v30 }
  0x7a   :  { %939 = vmatmul.msk.bf16.gmra.mxu3 %vm256_vm0, %v972_v31 }
  0x86   :  { %v362_v33 = vpop.f32.mrf.mxu0 }
  0x87   :  { %983 = vtanh.f32 %v362_v33  ;;  %v1307_v52 = vpop.f32.mrf.mxu1 }
  0x89   :  { %931 = vmatmul.msk.bf16.gmra.mxu2 %vm256_vm0, %v964_v32 }
  0x8a   :  { %940 = vmatmul.msk.bf16.gmra.mxu3 %vm256_vm0, %v973_v34 }
  0x8c   :  { %v1292_v35 = vpop.f32.mrf.mxu2 }
  0x8d   :  { %v1294_v36 = vpop.f32.mrf.mxu3  ;;  %v984_v38 = vpop.eup %983 }
  0x8e   :  { %v364_v37 = vpop.f32.mrf.mxu0  ;;  %v586_v39 = vsel %vm256_vm0, %v984_v38, 0.0 }
  0x8f   :  { %985 = vtanh.f32 %v364_v37  ;;  %v1314_v60 = vpop.f32.mrf.mxu1 }
  0x94   :  { %v1297_v40 = vpop.f32.mrf.mxu2 }
  0x95   :  { %v986_v41 = vpop.eup %985  ;;  %v1299_v42 = vpop.f32.mrf.mxu3 }
  0x96   :  { %v587_v43 = vsel %vm256_vm0, %v986_v41, 0.0  ;;  %v367_v44 = vpop.f32.mrf.mxu0 }
  0x97   :  { %v588_v45 = vadd.f32 %v587_v43, %v586_v39  ;;  %987 = vtanh.f32 %v367_v44  ;;  %v1319_v4 = vpop.f32.mrf.mxu1 }
  0x9c   :  { %v1302_v46 = vpop.f32.mrf.mxu2 }
  0x9d   :  { %v988_v47 = vpop.eup %987  ;;  %v1305_v50 = vpop.f32.mrf.mxu3 }
  0x9e   :  { %v589_v48 = vsel %vm256_vm0, %v988_v47, 0.0  ;;  %v369_v49 = vpop.f32.mrf.mxu0 }
  0x9f   :  { %v590_v51 = vadd.f32 %v589_v48, %v588_v45  ;;  %989 = vtanh.f32 %v369_v49  ;;  %v1325_v13 = vpop.f32.mrf.mxu1 }
  0xa4   :  { %v1309_v53 = vpop.f32.mrf.mxu2 }
  0xa5   :  { %v990_v54 = vpop.eup %989  ;;  %v1312_v58 = vpop.f32.mrf.mxu3 }
  0xa6   :  { %v591_v55 = vsel %vm256_vm0, %v990_v54, 0.0  ;;  %v372_v56 = vpop.f32.mrf.mxu0 }
  0xa7   :  { %v592_v57 = vadd.f32 %v591_v55, %v590_v51  ;;  %991 = vtanh.f32 %v372_v56  ;;  %v1334_v20 = vpop.f32.mrf.mxu1 }
  0xac   :  { %v442_v59 = vpop.f32.mrf.mxu2 }
  0xad   :  { %v992_v61 = vpop.eup %991  ;;  %v1317_v1 = vpop.f32.mrf.mxu3  ;;  %993 = vtanh.f32 %v442_v59 }
  0xae   :  { %v593_v62 = vsel %vm256_vm0, %v992_v61, 0.0  ;;  %v374_v63 = vpop.f32.mrf.mxu0 }
  0xaf   :  { %v594_v0 = vadd.f32 %v593_v62, %v592_v57  ;;  %v1340_v25 = vpop.f32.mrf.mxu1 }
  0xb3   :  { %v994_v5 = vpop.eup %993 }
  0xb4   :  { %v444_v2 = vpop.f32.mrf.mxu2  ;;  %v655_v7 = vsel %vm256_vm0, %v994_v5, 0.0 }
  0xb5   :  { %995 = vtanh.f32 %v444_v2  ;;  %v1323_v10 = vpop.f32.mrf.mxu3 }
  0xb6   :  { %v377_v3 = vpop.f32.mrf.mxu0 }
  0xb7   :  { %v1349_v31 = vpop.f32.mrf.mxu1 }
  0xbb   :  { %v996_v6 = vpop.eup %995 }
  0xbc   :  { %v656_v8 = vsel %vm256_vm0, %v996_v6, 0.0  ;;  %v447_v9 = vpop.f32.mrf.mxu2 }
  0xbd   :  { %v657_v11 = vadd.f32 %v656_v8, %v655_v7  ;;  %997 = vtanh.f32 %v447_v9  ;;  %v1332_v19 = vpop.f32.mrf.mxu3 }
  0xbe   :  { %v379_v12 = vpop.f32.mrf.mxu0  ;;  %999 = vtanh.f32 %v374_v63 }
  0xbf   :  { %v1355_v37 = vpop.f32.mrf.mxu1  ;;  %1001 = vtanh.f32 %v377_v3 }
  0xc0   :  { %1003 = vtanh.f32 %v379_v12 }
  0xc3   :  { %v998_v14 = vpop.eup %997 }
  0xc4   :  { %v658_v15 = vsel %vm256_vm0, %v998_v14, 0.0  ;;  %v1328_v16 = vpop.f32.mrf.mxu2  ;;  %v1000_v39 = vpop.eup %999 }
  0xc5   :  { %v1330_v17 = vadd.f32 %v658_v15, %v657_v11  ;;  %v1336_v23 = vpop.f32.mrf.mxu3  ;;  %v1002_v44 = vpop.eup %1001  ;;  %v595_v45 = vsel %vm256_vm0, %v1000_v39, 0.0  ;;  %v728_v11 = vld [vmem:[%s1482_s2 + $0x10] sm:$0xff] }
  0xc6   :  { %v382_v18 = vpop.f32.mrf.mxu0  ;;  %v1004_v47 = vpop.eup %1003  ;;  %v597_v48 = vsel %vm256_vm0, %v1002_v44, 0.0  ;;  %v596_v54 = vadd.f32 %v595_v45, %v594_v0  ;;  %749 = vmatpush.msrb.mxu1 %v728_v11 }
  0xc7   :  { %1005 = vtanh.f32 %v382_v18  ;;  %v1363_v49 = vpop.f32.mrf.mxu1  ;;  %v599_v55 = vsel %vm256_vm0, %v1004_v47, 0.0 }
  0xc8   :  { %v598_v59 = vadd.f32 %v597_v48, %v596_v54 }
  0xca   :  { %v600_v2 = vadd.f32 %v599_v55, %v598_v59 }
  0xcc   :  { %v452_v21 = vpop.f32.mrf.mxu2 }
  0xcd   :  { %v1345_v28 = vpop.f32.mrf.mxu3  ;;  %v1006_v51 = vpop.eup %1005 }
  0xce   :  { %v384_v22 = vpop.f32.mrf.mxu0  ;;  %v601_v61 = vsel %vm256_vm0, %v1006_v51, 0.0 }
  0xcf   :  { %1007 = vtanh.f32 %v384_v22  ;;  %v602_v0 = vadd.f32 %v601_v61, %v600_v2  ;;  %v1379_v15 = vpop.f32.mrf.mxu1 }
  0xd4   :  { %v1338_v24 = vpop.f32.mrf.mxu2 }
  0xd5   :  { %v1353_v33 = vpop.f32.mrf.mxu3  ;;  %v1008_v57 = vpop.eup %1007 }
  0xd6   :  { %v387_v26 = vpop.f32.mrf.mxu0  ;;  %v603_v3 = vsel %vm256_vm0, %v1008_v57, 0.0 }
  0xd7   :  { %1009 = vtanh.f32 %v387_v26  ;;  %v604_v9 = vadd.f32 %v603_v3, %v602_v0  ;;  %v427_v55 = vpop.f32.mrf.mxu1 }
  0xdc   :  { %v1347_v29 = vpop.f32.mrf.mxu2 }
  0xdd   :  { %v1359_v43 = vpop.f32.mrf.mxu3  ;;  %v1010_v63 = vpop.eup %1009 }
  0xde   :  { %v389_v30 = vpop.f32.mrf.mxu0  ;;  %v605_v7 = vsel %vm256_vm0, %v1010_v63, 0.0 }
  0xdf   :  { %1011 = vtanh.f32 %v389_v30  ;;  %v606_v22 = vadd.f32 %v605_v7, %v604_v9 }
  0xe4   :  { %v1351_v32 = vpop.f32.mrf.mxu2 }
  0xe5   :  { %v1370_v5 = vpop.f32.mrf.mxu3  ;;  %v1012_v6 = vpop.eup %1011 }
  0xe6   :  { %v392_v34 = vpop.f32.mrf.mxu0  ;;  %v607_v12 = vsel %vm256_vm0, %v1012_v6, 0.0 }
  0xe7   :  { %1013 = vtanh.f32 %v392_v34  ;;  %v608_v30 = vadd.f32 %v607_v12, %v606_v22 }
  0xec   :  { %v1357_v38 = vpop.f32.mrf.mxu2 }
  0xed   :  { %v1014_v8 = vpop.eup %1013 }
  0xee   :  { %v394_v41 = vpop.f32.mrf.mxu0 }
  0xef   :  { %1015 = vtanh.f32 %v394_v41 }
  0xf4   :  { %v1366_v56 = vpop.f32.mrf.mxu2 }
  0xf5   :  { %v1016_v18 = vpop.eup %1015 }
  0xf6   :  { %v397_v62 = vpop.f32.mrf.mxu0 }
  0xf7   :  { %1017 = vtanh.f32 %v397_v62 }
  0xf8   :  { %1019 = vtanh.f32 %v1307_v52  ;;  %v609_v52 = vsel %vm256_vm0, %v1014_v8, 0.0 }
  0xf9   :  { %1021 = vtanh.f32 %v1314_v60  ;;  %v611_v60 = vsel %vm256_vm0, %v1016_v18, 0.0  ;;  %v610_v39 = vadd.f32 %v609_v52, %v608_v30 }
  0xfa   :  { %1023 = vtanh.f32 %v1328_v16 }
  0xfb   :  { %1025 = vtanh.f32 %v452_v21  ;;  %v1388_v21 = vpop.f32.mrf.mxu3  ;;  %v612_v45 = vadd.f32 %v611_v60, %v610_v39  ;;  %v429_v60 = vpop.f32.mrf.mxu1 }
  0xfc   :  { %v467_v14 = vpop.f32.mrf.mxu2 }
  0xfd   :  { %v1018_v27 = vpop.eup %1017 }
  0xfe   :  { %v399_v26 = vpop.f32.mrf.mxu0  ;;  %v1020_v34 = vpop.eup %1019  ;;  %v613_v16 = vsel %vm256_vm0, %v1018_v27, 0.0 }
  0xff   :  { %1027 = vtanh.f32 %v399_v26  ;;  %v1022_v41 = vpop.eup %1021 }
 0x100   :  { %1029 = vtanh.f32 %v1319_v4  ;;  %v1024_v44 = vpop.eup %1023  ;;  %v619_v2 = vsel %vm256_vm0, %v1022_v41, 0.0 }
 0x101   :  { %1031 = vtanh.f32 %v1338_v24  ;;  %v1026_v47 = vpop.eup %1025  ;;  %v614_v24 = vadd.f32 %v613_v16, %v612_v45  ;;  %v660_v54 = vsel %vm256_vm0, %v1024_v44, 0.0 }
 0x102   :  { %1033 = vtanh.f32 %v1325_v13  ;;  %v662_v61 = vsel %vm256_vm0, %v1026_v47, 0.0  ;;  %v661_v62 = vadd.f32 %v660_v54, %v1330_v17 }
 0x103   :  { %1035 = vtanh.f32 %v1347_v29 }
 0x104   :  { %1037 = vtanh.f32 %v1334_v20  ;;  %v469_v4 = vpop.f32.mrf.mxu2  ;;  %v617_v20 = vsel %vm256_vm0, %v1020_v34, 0.0  ;;  %v663_v6 = vadd.f32 %v662_v61, %v661_v62 }
 0x105   :  { %v1028_v48 = vpop.eup %1027  ;;  %1039 = vtanh.f32 %v1351_v32 }
 0x106   :  { %v1030_v51 = vpop.eup %1029  ;;  %1041 = vtanh.f32 %v1340_v25  ;;  %v615_v13 = vsel %vm256_vm0, %v1028_v48, 0.0 }
 0x107   :  { %v1032_v57 = vpop.eup %1031  ;;  %1043 = vtanh.f32 %v1357_v38  ;;  %v616_v29 = vadd.f32 %v615_v13, %v614_v24 }
 0x108   :  { %v1034_v59 = vpop.eup %1033  ;;  %1045 = vtanh.f32 %v1349_v31  ;;  %v664_v3 = vsel %vm256_vm0, %v1032_v57, 0.0  ;;  %v621_v31 = vsel %vm256_vm0, %v1030_v51, 0.0 }
 0x109   :  { %v1036_v32 = vpop.eup %1035  ;;  %1047 = vtanh.f32 %v1366_v56  ;;  %v618_v25 = vadd.f32 %v617_v20, %v616_v29  ;;  %v1408_v56 = vpop.f32.mrf.mxu3  ;;  %v665_v11 = vadd.f32 %v664_v3, %v663_v6 }
 0x10a   :  { %v1038_v63 = vpop.eup %1037  ;;  %1049 = vtanh.f32 %v1355_v37  ;;  %v666_v8 = vsel %vm256_vm0, %v1036_v32, 0.0  ;;  %v623_v37 = vsel %vm256_vm0, %v1034_v59, 0.0 }
 0x10b   :  { %v1040_v38 = vpop.eup %1039  ;;  %1051 = vtanh.f32 %v467_v14  ;;  %v620_v0 = vadd.f32 %v619_v2, %v618_v25  ;;  %v667_v52 = vadd.f32 %v666_v8, %v665_v11 }
 0x10c   :  { %v1042_v7 = vpop.eup %1041  ;;  %1053 = vtanh.f32 %v1363_v49  ;;  %v472_v17 = vpop.f32.mrf.mxu2  ;;  %v668_v14 = vsel %vm256_vm0, %v1040_v38, 0.0  ;;  %v625_v49 = vsel %vm256_vm0, %v1038_v63, 0.0 }
 0x10d   :  { %v1044_v9 = vpop.eup %1043  ;;  %v622_v12 = vadd.f32 %v621_v31, %v620_v0  ;;  %1055 = vtanh.f32 %v469_v4  ;;  %v669_v39 = vadd.f32 %v668_v14, %v667_v52  ;;  %v627_v44 = vsel %vm256_vm0, %v1042_v7, 0.0 }
 0x10e   :  { %v1046_v18 = vpop.eup %1045  ;;  %1057 = vtanh.f32 %v1379_v15  ;;  %v670_v30 = vsel %vm256_vm0, %v1044_v9, 0.0 }
 0x10f   :  { %v1048_v22 = vpop.eup %1047  ;;  %v624_v26 = vadd.f32 %v623_v37, %v622_v12  ;;  %1059 = vtanh.f32 %v472_v17  ;;  %v671_v47 = vadd.f32 %v670_v30, %v669_v39  ;;  %v629_v24 = vsel %vm256_vm0, %v1046_v18, 0.0 }
 0x110   :  { %v1050_v27 = vpop.eup %1049  ;;  %1061 = vtanh.f32 %v427_v55  ;;  %v672_v45 = vsel %vm256_vm0, %v1048_v22, 0.0 }
 0x111   :  { %v1052_v34 = vpop.eup %1051  ;;  %v626_v41 = vadd.f32 %v625_v49, %v624_v26  ;;  %1063 = vtanh.f32 %v429_v60  ;;  %v673_v57 = vadd.f32 %v672_v45, %v671_v47  ;;  %v631_v29 = vsel %vm256_vm0, %v1050_v27, 0.0  ;;  %v1424_v61 = vpop.f32.mrf.mxu3 }
 0x112   :  { %v1054_v16 = vpop.eup %1053  ;;  %1065 = vtanh.f32 %v1294_v36  ;;  %v674_v51 = vsel %vm256_vm0, %v1052_v34, 0.0 }
 0x113   :  { %v1056_v15 = vpop.eup %1055  ;;  %v628_v4 = vadd.f32 %v627_v44, %v626_v41  ;;  %v633_v59 = vsel %vm256_vm0, %v1054_v16, 0.0  ;;  %v675_v32 = vadd.f32 %v674_v51, %v673_v57 }
 0x114   :  { %v1058_v48 = vpop.eup %1057  ;;  %v474_v54 = vpop.f32.mrf.mxu2  ;;  %v676_v20 = vsel %vm256_vm0, %v1056_v15, 0.0 }
 0x115   :  { %v1060_v13 = vpop.eup %1059  ;;  %v630_v55 = vadd.f32 %v629_v24, %v628_v4  ;;  %1067 = vtanh.f32 %v474_v54  ;;  %v635_v25 = vsel %vm256_vm0, %v1058_v48, 0.0  ;;  %v677_v3 = vadd.f32 %v676_v20, %v675_v32 }
 0x116   :  { %1069 = vtanh.f32 %v1292_v35  ;;  %v1062_v36 = vpop.eup %1061  ;;  %v678_v63 = vsel %vm256_vm0, %v1060_v13, 0.0 }
 0x117   :  { %1071 = vtanh.f32 %v1299_v42  ;;  %v632_v62 = vadd.f32 %v631_v29, %v630_v55  ;;  %v1064_v35 = vpop.eup %1063  ;;  %v637_v6 = vsel %vm256_vm0, %v1062_v36, 0.0  ;;  %v679_v7 = vadd.f32 %v678_v63, %v677_v3 }
 0x118   :  { %1073 = vtanh.f32 %v1297_v40  ;;  %v1066_v38 = vpop.eup %1065  ;;  %v639_v8 = vsel %vm256_vm0, %v1064_v35, 0.0 }
 0x119   :  { %1075 = vtanh.f32 %v1305_v50  ;;  %v634_v2 = vadd.f32 %v633_v59, %v632_v62  ;;  %v514_v22 = vpop.f32.mrf.mxu3 }
 0x11a   :  { %1077 = vtanh.f32 %v1302_v46  ;;  %v727_v46 = vld [vmem:[%s1482_s2 + $0x8] sm:$0xff] }
 0x11b   :  { %v1068_v0 = vpop.eup %1067  ;;  %1079 = vtanh.f32 %v1312_v58  ;;  %v636_v42 = vadd.f32 %v635_v25, %v634_v2  ;;  %v682_v58 = vsel %vm256_vm0, %v1066_v38, 0.0  ;;  %750 = vmatpush.msrb.mxu1 %v727_v46 }
 0x11c   :  { %v1070_v40 = vpop.eup %1069  ;;  %1081 = vtanh.f32 %v1309_v53  ;;  %v680_v31 = vsel %vm256_vm0, %v1068_v0, 0.0 }
 0x11d   :  { %v1072_v50 = vpop.eup %1071  ;;  %1083 = vtanh.f32 %v1317_v1  ;;  %v638_v17 = vadd.f32 %v637_v6, %v636_v42  ;;  %v681_v9 = vadd.f32 %v680_v31, %v679_v7  ;;  %v641_v14 = vsel %vm256_vm0, %v1070_v40, 0.0 }
 0x11e   :  { %v1074_v11 = vpop.eup %1073  ;;  %1085 = vtanh.f32 %v1323_v10  ;;  %v684_v1 = vsel %vm256_vm0, %v1072_v50, 0.0 }
 0x11f   :  { %v1076_v12 = vpop.eup %1075  ;;  %v683_v53 = vadd.f32 %v682_v58, %v681_v9  ;;  %v640_v18 = vadd.f32 %v639_v8, %v638_v17  ;;  %1087 = vtanh.f32 %v1332_v19  ;;  %v643_v30 = vsel %vm256_vm0, %v1074_v11, 0.0 }
 0x120   :  { %v1078_v37 = vpop.eup %1077  ;;  %v686_v60 = vsel %vm256_vm0, %v1076_v12, 0.0  ;;  %1089 = vtanh.f32 %v1336_v23  ;;  %v726_v23 = vld [vmem:[%s1482_s2] sm:$0xff]  ;;  %s1137_s2 = smov [#allocation2]  }
 0x121   :  { %v1080_v52 = vpop.eup %1079  ;;  %v685_v26 = vadd.f32 %v684_v1, %v683_v53  ;;  %v642_v27 = vadd.f32 %v641_v14, %v640_v18  ;;  %v645_v41 = vsel %vm256_vm0, %v1078_v37, 0.0  ;;  %1091 = vtanh.f32 %v1345_v28  ;;  %751 = vmatpush.msrb.mxu1 %v726_v23  ;;  %v517_v57 = vpop.f32.mrf.mxu3  ;;  %s762_s30 = sshll.u32 %s1137_s2, 4  ;;  %s763_s30 = int_to_ptr.vmem [resolvable:$true] %s762_s30 }
 0x122   :  { %v1082_v49 = vpop.eup %1081  ;;  %v688_v16 = vsel %vm256_vm0, %v1080_v52, 0.0  ;;  %1093 = vtanh.f32 %v1353_v33 }
 0x123   :  { %v1084_v34 = vpop.eup %1083  ;;  %v687_v10 = vadd.f32 %v686_v60, %v685_v26  ;;  %v644_v39 = vadd.f32 %v643_v30, %v642_v27  ;;  %v647_v15 = vsel %vm256_vm0, %v1082_v49, 0.0  ;;  %1095 = vtanh.f32 %v1359_v43 }
 0x124   :  { %v1086_v44 = vpop.eup %1085  ;;  %v690_v47 = vsel %vm256_vm0, %v1084_v34, 0.0  ;;  %1097 = vtanh.f32 %v1370_v5 }
 0x125   :  { %v689_v19 = vadd.f32 %v688_v16, %v687_v10  ;;  %v646_v45 = vadd.f32 %v645_v41, %v644_v39  ;;  %v1088_v4 = vpop.eup %1087  ;;  %v692_v51 = vsel %vm256_vm0, %v1086_v44, 0.0  ;;  %1099 = vtanh.f32 %v1388_v21 }
 0x126   :  { %v1090_v54 = vpop.eup %1089  ;;  %v694_v13 = vsel %vm256_vm0, %v1088_v4, 0.0  ;;  %1101 = vtanh.f32 %v1408_v56 }
 0x127   :  { %v691_v48 = vadd.f32 %v690_v47, %v689_v19  ;;  %v648_v24 = vadd.f32 %v647_v15, %v646_v45  ;;  %v1092_v55 = vpop.eup %1091  ;;  %v696_v29 = vsel %vm256_vm0, %v1090_v54, 0.0  ;;  %1103 = vtanh.f32 %v1424_v61 }
 0x128   :  { %v1094_v59 = vpop.eup %1093  ;;  %v698_v36 = vsel %vm256_vm0, %v1092_v55, 0.0  ;;  %1105 = vtanh.f32 %v514_v22 }
 0x129   :  { %v693_v28 = vadd.f32 %v692_v51, %v691_v48  ;;  %v1096_v32 = vpop.eup %1095  ;;  %v700_v62 = vsel %vm256_vm0, %v1094_v59, 0.0  ;;  %v519_v3 = vpop.f32.mrf.mxu3  ;;  %1107 = vtanh.f32 %v517_v57  ;;  %v649_v7 = vrot.slane %v648_v24, 4 }
 0x12a   :  { %v1098_v25 = vpop.eup %1097  ;;  %v702_v5 = vsel %vm256_vm0, %v1096_v32, 0.0  ;;  %1109 = vtanh.f32 %v519_v3 }
 0x12b   :  { %v695_v33 = vadd.f32 %v694_v13, %v693_v28  ;;  %v1100_v35 = vpop.eup %1099  ;;  %v704_v21 = vsel %vm256_vm0, %v1098_v25, 0.0  ;;  %v650_v9 = vadd.f32 %v649_v7, %v648_v24 }
 0x12c   :  { %v1102_v38 = vpop.eup %1101  ;;  %v706_v56 = vsel %vm256_vm0, %v1100_v35, 0.0 }
 0x12d   :  { %v697_v20 = vadd.f32 %v696_v29, %v695_v33  ;;  %v1104_v0 = vpop.eup %1103  ;;  %v708_v61 = vsel %vm256_vm0, %v1102_v38, 0.0  ;;  %v651_v18 = vrot.slane %v650_v9, 2 }
 0x12e   :  { %v1106_v40 = vpop.eup %1105  ;;  %v710_v8 = vsel %vm256_vm0, %v1104_v0, 0.0 }
 0x12f   :  { %v699_v43 = vadd.f32 %v698_v36, %v697_v20  ;;  %v1108_v50 = vpop.eup %1107  ;;  %v712_v46 = vsel %vm256_vm0, %v1106_v40, 0.0  ;;  %v652_v22 = vadd.f32 %v651_v18, %v650_v9 }
 0x130   :  { %v1110_v11 = vpop.eup %1109  ;;  %v714_v12 = vsel %vm256_vm0, %v1108_v50, 0.0 }
 0x131   :  { %v701_v63 = vadd.f32 %v700_v62, %v699_v43  ;;  %v716_v37 = vsel %vm256_vm0, %v1110_v11, 0.0  ;;  %v653_v27 = vrot.slane %v652_v22, 1 }
 0x133   :  { %v703_v2 = vadd.f32 %v702_v5, %v701_v63  ;;  %v654_v30 = vadd.f32 %v653_v27, %v652_v22 }
 0x135   :  { %v705_v6 = vadd.f32 %v704_v21, %v703_v2  ;;  %v724_v10 = vmul.f32 0.00390625, %v654_v30 }
 0x137   :  { %v707_v42 = vadd.f32 %v706_v56, %v705_v6 }
 0x139   :  { %v709_v31 = vadd.f32 %v708_v61, %v707_v42 }
 0x13b   :  { %v711_v17 = vadd.f32 %v710_v8, %v709_v31 }
 0x13d   :  { %v713_v58 = vadd.f32 %v712_v46, %v711_v17 }
 0x13f   :  { %v715_v53 = vadd.f32 %v714_v12, %v713_v58 }
 0x141   :  { %v717_v14 = vadd.f32 %v716_v37, %v715_v53 }
 0x143   :  { %v718_v1 = vrot.slane %v717_v14, 4 }
 0x145   :  { %v719_v52 = vadd.f32 %v718_v1, %v717_v14 }
 0x147   :  { %v720_v26 = vrot.slane %v719_v52, 2 }
 0x149   :  { %v721_v49 = vadd.f32 %v720_v26, %v719_v52 }
 0x14b   :  { %v722_v60 = vrot.slane %v721_v49, 1 }
 0x14d   :  { %v723_v34 = vadd.f32 %v722_v60, %v721_v49 }
 0x14f   :  { %v725_v39 = vmul.f32 0.00390625, %v723_v34 }
 0x151   :  { %v733_v41 = vsel %vm732_vm1, %v725_v39, %v724_v10 }
 0x152   :  { %941 = vmatmul.msk.f32.vlgmr.msrb.gmra.mxu1 %vm256_vm0, %v733_v41 }
 0x1cf   :  { %v753_v16 = vpop.f32.mrf.mxu1 }
 0x1d0   :  { %756 = vst [vmem:[#allocation2] sm:$0x3] %v753_v16 }
 0x1d1   :  { %767 = dma.vmem_to_hbm [thread:$0]  %s763_s30, 32, %s765_s6, [#allocation3]  }
 0x1d2   :  { %1135 = dma.done.wait [#allocation3], 32  }
 0x1d3   :  { %1136 = vsyncadd [#allocation3], 4294967264 }
 0x1d4   :  { %772 = vsyncpa [#allocation3], 1 }

</bundles_post_ra>
